<compile_context>
chip_gen: v7x
topology: tpu7x:2x2x1
jax: 0.10.0
libtpu: 0.0.40
codegen_flags: <defaults>
</compile_context>

<pallas_src>
import jax
import jax.numpy as jnp
from jax.experimental import pallas as pl
from jax.experimental.pallas import tpu as pltpu


_LANE = 128
_ROW_ALIGN = 32          # multiple of packed sublane tiles for f32/bf16/int8
_MAX_ROW_TILE = 1024     # >=512-row tiles already reach ~85% of HBM roofline
_VMEM_BUDGET = 40 << 20  # conservative: fits v7x's 64 MiB physical VMEM


def _round_up(x, m):
    return ((x + m - 1) // m) * m


def _pick_row_tile(n_rows, feat, itemsize):
    """Largest row tile fitting the VMEM budget (3 double-buffered operands in
    their storage dtype + f32 working copies), aligned to the packed-sublane
    tile, capped at _MAX_ROW_TILE and at the (rounded-up) array size."""
    per_row = 6 * feat * itemsize + 3 * feat * 4  # 2-buffered x/msg/out + f32 temps
    tile = max(_ROW_ALIGN, (_VMEM_BUDGET // per_row) // _ROW_ALIGN * _ROW_ALIGN)
    tile = min(tile, _MAX_ROW_TILE)
    tile = min(tile, _round_up(max(n_rows, 1), _ROW_ALIGN))
    # Keep >=2 grid steps when there is enough work so the (trivially parallel)
    # row axis can be sharded across the two TensorCores of a v7x chip.
    if n_rows > 2 * _ROW_ALIGN and -(-n_rows // tile) < 2:
        tile = max(_ROW_ALIGN, _round_up(-(-n_rows // 2), _ROW_ALIGN))
    return tile


def _msgnorm_kernel(scale_ref, x_ref, msg_ref, out_ref):
    """Per-row L2 normalization of msg, rescaled by ||x||_2 and msg_scale.

    scale_ref : SMEM (1,) float32   -- the msg_scale parameter
    x_ref     : VMEM (TN, D) tile of x
    msg_ref   : VMEM (TN, D) tile of msg
    out_ref   : VMEM (TN, D) tile of output
    """
    eps = jnp.float32(1e-12)  # F.normalize default eps

    x = x_ref[...].astype(jnp.float32)
    m = msg_ref[...].astype(jnp.float32)

    # Row-wise L2 norms (reduction over feature/lane dim), accumulated in f32.
    msg_norm = jnp.sqrt(jnp.sum(m * m, axis=-1, keepdims=True))  # (TN, 1)
    x_norm = jnp.sqrt(jnp.sum(x * x, axis=-1, keepdims=True))    # (TN, 1)

    # Per-row coefficient.  The approximate reciprocal runs on the EUP slot,
    # leaving a single VPU multiply as the only full-tile elementwise work.
    inv = pl.reciprocal(jnp.maximum(msg_norm, eps), approx=True)  # (TN, 1)
    coef = x_norm * scale_ref[0] * inv                            # (TN, 1)

    if msg_ref.dtype == jnp.bfloat16:
        # Keep the wide multiply in packed bf16 vregs (v6e/v7x bf16 VPU).
        out = msg_ref[...] * coef.astype(jnp.bfloat16)
    else:
        out = m * coef
    out_ref[...] = out.astype(out_ref.dtype)


def msg_norm(x, msg, msg_scale, *, row_tile=None):
    """MsgNorm forward. x, msg: [N, D]; msg_scale: scalar parameter (shape (1,))."""
    assert x.shape == msg.shape and x.ndim == 2
    N, D = x.shape
    itemsize = max(jnp.dtype(x.dtype).itemsize, jnp.dtype(msg.dtype).itemsize)
    if row_tile is None:
        row_tile = _pick_row_tile(N, D, itemsize)

    scale = jnp.asarray(msg_scale, jnp.float32).reshape((1,))

    grid = (pl.cdiv(N, row_tile),)  # ragged last block handled by Pallas
    row_spec = pl.BlockSpec((row_tile, D), lambda i: (i, 0))

    # Explicit scoped-VMEM limit so large tiles compile on every generation
    # (default scoped limit is 16/32 MiB); capped below v7x's 64 MiB physical.
    tile_elems = row_tile * D
    vmem_needed = 6 * tile_elems * itemsize + 3 * tile_elems * 4
    vmem_limit = int(min(max(vmem_needed + (8 << 20), 32 << 20), 56 << 20))

    return pl.pallas_call(
        _msgnorm_kernel,
        out_shape=jax.ShapeDtypeStruct((N, D), msg.dtype),
        grid=grid,
        in_specs=[
            pl.BlockSpec(memory_space=pltpu.MemorySpace.SMEM),  # msg_scale scalar
            row_spec,                                           # x
            row_spec,                                           # msg
        ],
        out_specs=row_spec,
        compiler_params=pltpu.CompilerParams(
            dimension_semantics=("parallel",),
            vmem_limit_bytes=vmem_limit,
        ),
    )(scale, x, msg)


def msg_norm_ref(x, msg, msg_scale):
    """Pure-JAX reference (mirrors the PyTorch forward)."""
    eps = 1e-12
    msg_n = msg / jnp.maximum(
        jnp.linalg.norm(msg, ord=2, axis=1, keepdims=True), eps
    )
    x_norm = jnp.linalg.norm(x, ord=2, axis=1, keepdims=True)
    return msg_n * x_norm * msg_scale


if __name__ == "__main__":
    # Deterministic parameter init matching MsgNorm.reset_parameters().
    msg_scale = jnp.ones((1,), dtype=jnp.float32)
    key = jax.random.PRNGKey(0)

    def check(N, D, dtype, tol):
        kx, km = jax.random.split(jax.random.fold_in(key, N * 1000 + D))
        x = jax.random.normal(kx, (N, D), dtype=jnp.float32).astype(dtype)
        msg = jax.random.normal(km, (N, D), dtype=jnp.float32).astype(dtype)

        out = jax.block_until_ready(msg_norm(x, msg, msg_scale))

        ref = msg_norm_ref(
            x.astype(jnp.float32), msg.astype(jnp.float32), msg_scale
        )
        assert out.shape == (N, D) and out.dtype == dtype
        assert jnp.allclose(out.astype(jnp.float32), ref, atol=tol, rtol=tol), (
            f"mismatch vs reference for N={N} D={D} dtype={dtype}"
        )

    # Small shapes consistent with a GNN node-feature workload.
    check(64, 128, jnp.float32, 3e-3)    # lane-dense D (multiple of 128)
    check(50, 96, jnp.float32, 3e-3)     # ragged N (cdiv grid), D == full lane dim
    check(64, 128, jnp.bfloat16, 3e-2)   # bf16 path (packed-vreg multiply)

    print("KERNEL_OK")
</pallas_src>

<mosaic_0001>
module attributes {stable_mosaic.version = 11 : i64} {
  func.func @_msgnorm_kernel(%arg0: i32, %arg1: memref<1xf32, #tpu.memory_space<smem>>, %arg2: memref<64x128xf32, #tpu.memory_space<vmem>>, %arg3: memref<64x128xf32, #tpu.memory_space<vmem>>, %arg4: memref<64x128xf32, #tpu.memory_space<vmem>>) attributes {dimension_semantics = [#tpu.dimension_semantics<parallel>], iteration_bounds = array<i64: 1>, scalar_prefetch = 0 : i64, scratch_operands = 0 : i64, tpu.core_type = #tpu.core_type<tc>, window_params = [{transform_indices = @transform_0, window_bounds = array<i64: 1>}, {transform_indices = @transform_1, window_bounds = array<i64: 64, 128>}, {transform_indices = @transform_2, window_bounds = array<i64: 64, 128>}, {transform_indices = @transform_3, window_bounds = array<i64: 64, 128>}]} {
    %c0 = arith.constant 0 : index
    %c0_0 = arith.constant 0 : index
    %0 = vector.load %arg2[%c0, %c0_0] : memref<64x128xf32, #tpu.memory_space<vmem>>, vector<64x128xf32>
    %c0_1 = arith.constant 0 : index
    %c0_2 = arith.constant 0 : index
    %1 = vector.load %arg3[%c0_1, %c0_2] : memref<64x128xf32, #tpu.memory_space<vmem>>, vector<64x128xf32>
    %2 = arith.mulf %1, %1 : vector<64x128xf32>
    %cst = arith.constant dense<0.000000e+00> : vector<64xf32>
    %3 = vector.multi_reduction <add>, %2, %cst [1] : vector<64x128xf32> to vector<64xf32>
    %4 = vector.shape_cast %3 : vector<64xf32> to vector<64x1xf32>
    %5 = math.sqrt %4 : vector<64x1xf32>
    %6 = arith.mulf %0, %0 : vector<64x128xf32>
    %cst_3 = arith.constant dense<0.000000e+00> : vector<64xf32>
    %7 = vector.multi_reduction <add>, %6, %cst_3 [1] : vector<64x128xf32> to vector<64xf32>
    %8 = vector.shape_cast %7 : vector<64xf32> to vector<64x1xf32>
    %9 = math.sqrt %8 : vector<64x1xf32>
    %cst_4 = arith.constant 9.99999996E-13 : f32
    %10 = vector.broadcast %cst_4 : f32 to vector<64x1xf32>
    %11 = arith.maximumf %5, %10 : vector<64x1xf32>
    %12 = tpu.reciprocal %11 {approx = true} : vector<64x1xf32> -> vector<64x1xf32>
    %c0_5 = arith.constant 0 : index
    %13 = memref.load %arg1[%c0_5] : memref<1xf32, #tpu.memory_space<smem>>
    %14 = vector.broadcast %13 : f32 to vector<64x1xf32>
    %15 = arith.mulf %9, %14 : vector<64x1xf32>
    %16 = arith.mulf %15, %12 : vector<64x1xf32>
    %17 = vector.broadcast %16 : vector<64x1xf32> to vector<64x128xf32>
    %18 = arith.mulf %1, %17 : vector<64x128xf32>
    %c0_6 = arith.constant 0 : index
    %c0_7 = arith.constant 0 : index
    %19 = vector.load %arg4[%c0_6, %c0_7] : memref<64x128xf32, #tpu.memory_space<vmem>>, vector<64x128xf32>
    tpu.vector_store %arg4[%c0_6, %c0_7], %18 {strides = array<i32>} : memref<64x128xf32, #tpu.memory_space<vmem>>, vector<64x128xf32>,
    return
  }
  func.func @transform_0(%arg0: i32) -> i32 {
    %c0_i32 = arith.constant 0 : i32
    %c0_i32_0 = arith.constant 0 : i32
    return %c0_i32 : i32
  }
  func.func @transform_1(%arg0: i32) -> (i32, i32) {
    %c0_i32 = arith.constant 0 : i32
    %c0_i32_0 = arith.constant 0 : i32
    return %arg0, %c0_i32 : i32, i32
  }
  func.func @transform_2(%arg0: i32) -> (i32, i32) {
    %c0_i32 = arith.constant 0 : i32
    %c0_i32_0 = arith.constant 0 : i32
    return %arg0, %c0_i32 : i32, i32
  }
  func.func @transform_3(%arg0: i32) -> (i32, i32) {
    %c0_i32 = arith.constant 0 : i32
    %c0_i32_0 = arith.constant 0 : i32
    return %arg0, %c0_i32 : i32, i32
  }
}

</mosaic_0001>

<bundles_post_ra>
// kernel: tpu_custom_call.1
= control target key start
LH: loop header
LB: loop body
LE: loop exit
PB: predicated region body
PF: predicated region fallthrough
CT: control target
= control target key end

     0   :  { %9 = vsyncpa [#allocation4], 0  ;;  %s674_s0 = inlined_call_operand.<no memory space> [shape: f32[1], index: 0, kind: input, shape index: {}]   ;;  %s675_s1 = inlined_call_operand.hbm [shape: f32[64,128], index: 1, kind: input, shape index: {}]   ;;  %s676_s2 = inlined_call_operand.hbm [shape: f32[64,128], index: 2, kind: input, shape index: {}]   ;;  %s677_s3 = inlined_call_operand.hbm [shape: f32[64,128], index: 3, kind: output, shape index: {}]  }
   0x1   :  { %10 = vsyncpa [#allocation7], 0 }
   0x2   :  { %11 = vsyncpa [#allocation5], 0  ;;  %s413_s12 = smov [#allocation3]   ;;  %s341_s16 = scalar_lea.hbm %s675_s1, 1024 }
   0x3   :  { %s19_s13 = sshll.u32 %s413_s12, 4  ;;  %p342_p0 = scmp.ne.s32.totalorder %s675_s1, %s341_s16  ;;  %s20_s13 = int_to_ptr.vmem [resolvable:$true] %s19_s13 }
   0x4   :  { %p345_p1 = scmp.lt.u32.totalorder %s341_s16, %s675_s1 }
   0x6   :  { %p347_p2 = pnand %p345_p1, %p342_p0 }
   0x8   :  { %350 = shalt.err (!%p347_p2)
}
   0x9   :  { %s351_s21 = scalar_lea.vmem %s20_s13, 1024  ;;  %p356_p4 = scmp.lt.s32.totalorder %s20_s13, %s20_s13 }
   0xa   :  { %p352_p3 = scmp.ne.s32.totalorder %s20_s13, %s351_s21  ;;  %p357_p5 = scmp.lt.s32.totalorder %s351_s21, %s351_s21 }
   0xc   :  { %p358_p6 = por %p357_p5, %p356_p4 }
   0xe   :  { %p359_p7 = pnand %p358_p6, %p352_p3 }
  0x10   :  { %362 = shalt.err (!%p359_p7)
}
  0x11   :  { %s414_s22 = smov 128   ;;  %s415_s23 = smov 8  }
  0x12   :  { %25 = dma.hbm_to_vmem [thread:$0]  %s675_s1, 1024, %s20_s13, [#allocation4], %s414_s22, %s414_s22, %s415_s23  }
  0x13   :  { %s416_s26 = smov [#allocation6]   ;;  %s363_s30 = scalar_lea.hbm %s676_s2, 1024 }
  0x14   :  { %s31_s27 = sshll.u32 %s416_s26, 4  ;;  %p364_p8 = scmp.ne.s32.totalorder %s676_s2, %s363_s30  ;;  %s32_s27 = int_to_ptr.vmem [resolvable:$true] %s31_s27 }
  0x15   :  { %p367_p9 = scmp.lt.u32.totalorder %s363_s30, %s676_s2 }
  0x17   :  { %p369_p10 = pnand %p367_p9, %p364_p8 }
  0x19   :  { %372 = shalt.err (!%p369_p10)
}
  0x1a   :  { %s373_s8 = scalar_lea.vmem %s32_s27, 1024  ;;  %p378_p12 = scmp.lt.s32.totalorder %s32_s27, %s32_s27 }
  0x1b   :  { %p374_p11 = scmp.ne.s32.totalorder %s32_s27, %s373_s8  ;;  %p379_p13 = scmp.lt.s32.totalorder %s373_s8, %s373_s8 }
  0x1d   :  { %p380_p0 = por %p379_p13, %p378_p12 }
  0x1f   :  { %p381_p1 = pnand %p380_p0, %p374_p11 }
  0x21   :  { %384 = shalt.err (!%p381_p1)
}
  0x22   :  { %37 = dma.hbm_to_vmem [thread:$0]  %s676_s2, 1024, %s32_s27, [#allocation7], %s414_s22, %s414_s22, %s415_s23  }
  0x23   :  { %407 = dma.done.wait [#allocation4], 1024  }
  0x24   :  { %408 = vsyncadd [#allocation4], 4294966272 }
  0x25   :  { %409 = dma.done.wait [#allocation7], 1024  }
  0x26   :  { %410 = vsyncadd [#allocation7], 4294966272  ;;  %v468_v0 = vld [vmem:[#allocation6 + $0x10] sm:$0xff]  ;;  %v470_v1 = vld [vmem:[#allocation6] sm:$0xff]  ;;  %v513_v43 = vstv %s674_s0  ;;  %s417_s0 = smov [#allocation8]  }
  0x27   :  { %v472_v2 = vld [vmem:[#allocation6 + $0x18] sm:$0xff]  ;;  %v62_v3 = vmul.f32 %v468_v0, %v468_v0  ;;  %v60_v4 = vmul.f32 %v470_v1, %v470_v1  ;;  %v478_v5 = vld [vmem:[#allocation6 + $0x8] sm:$0xff]  ;;  %v486_v9 = vld [vmem:[#allocation6 + $0x20] sm:$0xff]  ;;  %s275_s11 = sshll.u32 %s417_s0, 4  ;;  %s276_s11 = int_to_ptr.vmem [resolvable:$true] %s275_s11 }
  0x28   :  { %v63_v6 = vmul.f32 %v472_v2, %v472_v2  ;;  %v61_v7 = vmul.f32 %v478_v5, %v478_v5  ;;  %v484_v8 = vld [vmem:[#allocation6 + $0x28] sm:$0xff]  ;;  %v64_v11 = vmul.f32 %v486_v9, %v486_v9  ;;  %v492_v12 = vld [vmem:[#allocation6 + $0x38] sm:$0xff]  ;;  %v494_v13 = vld [vmem:[#allocation6 + $0x30] sm:$0xff]  ;;  %s385_s12 = scalar_lea.vmem %s276_s11, 1024  ;;  %p390_p3 = scmp.lt.s32.totalorder %s276_s11, %s276_s11 }
  0x29   :  { %72 = vadd.xlane.f32.xlu1 %v62_v3  ;;  %68 = vadd.xlane.f32.xlu0 %v60_v4  ;;  %v65_v10 = vmul.f32 %v484_v8, %v484_v8  ;;  %v67_v14 = vmul.f32 %v492_v12, %v492_v12  ;;  %v66_v15 = vmul.f32 %v494_v13, %v494_v13  ;;  %v45_v16 = vld [vmem:[#allocation3 + $0x8] sm:$0xff]  ;;  %v44_v17 = vld [vmem:[#allocation3] sm:$0xff]  ;;  %v47_v20 = vld [vmem:[#allocation3 + $0x18] sm:$0xff]  ;;  %p386_p2 = scmp.ne.s32.totalorder %s276_s11, %s385_s12  ;;  %p391_p4 = scmp.lt.s32.totalorder %s385_s12, %s385_s12 }
  0x2a   :  { %v141_v18 = vmul.f32 %v45_v16, %v45_v16  ;;  %v140_v19 = vmul.f32 %v44_v17, %v44_v17  ;;  %v46_v21 = vld [vmem:[#allocation3 + $0x10] sm:$0xff]  ;;  %v143_v22 = vmul.f32 %v47_v20, %v47_v20  ;;  %v49_v24 = vld [vmem:[#allocation3 + $0x28] sm:$0xff]  ;;  %v48_v25 = vld [vmem:[#allocation3 + $0x20] sm:$0xff] }
  0x2b   :  { %v142_v23 = vmul.f32 %v46_v21, %v46_v21  ;;  %v145_v26 = vmul.f32 %v49_v24, %v49_v24  ;;  %v144_v27 = vmul.f32 %v48_v25, %v48_v25  ;;  %v51_v28 = vld [vmem:[#allocation3 + $0x38] sm:$0xff]  ;;  %v50_v29 = vld [vmem:[#allocation3 + $0x30] sm:$0xff]  ;;  %p392_p5 = por %p391_p4, %p390_p3 }
  0x2c   :  { %v147_v30 = vmul.f32 %v51_v28, %v51_v28  ;;  %v146_v31 = vmul.f32 %v50_v29, %v50_v29 }
  0x2d   :  { %74 = vadd.xlane.f32.xlu1 %v63_v6  ;;  %70 = vadd.xlane.f32.xlu0 %v61_v7  ;;  %p393_p6 = pnand %p392_p5, %p386_p2 }
  0x31   :  { %78 = vadd.xlane.f32.xlu1 %v65_v10  ;;  %76 = vadd.xlane.f32.xlu0 %v64_v11 }
  0x35   :  { %82 = vadd.xlane.f32.xlu1 %v67_v14  ;;  %80 = vadd.xlane.f32.xlu0 %v66_v15 }
  0x39   :  { %150 = vadd.xlane.f32.xlu1 %v141_v18  ;;  %148 = vadd.xlane.f32.xlu0 %v140_v19 }
  0x3d   :  { %154 = vadd.xlane.f32.xlu1 %v143_v22  ;;  %152 = vadd.xlane.f32.xlu0 %v142_v23 }
  0x41   :  { %158 = vadd.xlane.f32.xlu1 %v145_v26  ;;  %156 = vadd.xlane.f32.xlu0 %v144_v27 }
  0x45   :  { %162 = vadd.xlane.f32.xlu1 %v147_v30  ;;  %160 = vadd.xlane.f32.xlu0 %v146_v31 }
  0xb6   :  { %v73_v32 = vpop.xlane.xlu1 %72  ;;  %v69_v33 = vpop.xlane.xlu0 %68 }
  0xb7   :  { %293 = vrsqrt.f32 %v73_v32  ;;  %vm100_vm0 = vcmp.eq.f32.partialorder %v73_v32, inf  ;;  %v103_v44 = vand.u32 2147483648, %v73_v32  ;;  %vm102_vm1 = vcmp.eq.f32.partialorder %v73_v32, 0.0 }
  0xb8   :  { %295 = vrsqrt.f32 %v69_v33  ;;  %vm86_vm2 = vcmp.eq.f32.partialorder %v69_v33, inf  ;;  %vm88_vm3 = vcmp.eq.f32.partialorder %v69_v33, 0.0  ;;  %v89_v49 = vand.u32 2147483648, %v69_v33 }
  0xba   :  { %v75_v34 = vpop.xlane.xlu1 %74  ;;  %v71_v35 = vpop.xlane.xlu0 %70 }
  0xbb   :  { %297 = vrsqrt.f32 %v75_v34  ;;  %vm107_vm4 = vcmp.eq.f32.partialorder %v75_v34, inf  ;;  %vm109_vm5 = vcmp.eq.f32.partialorder %v75_v34, 0.0  ;;  %v110_v53 = vand.u32 2147483648, %v75_v34 }
  0xbc   :  { %299 = vrsqrt.f32 %v71_v35  ;;  %vm93_vm6 = vcmp.eq.f32.partialorder %v71_v35, inf  ;;  %vm95_vm7 = vcmp.eq.f32.partialorder %v71_v35, 0.0  ;;  %v96_v59 = vand.u32 2147483648, %v71_v35 }
  0xbe   :  { %v500_v36 = vpop.xlane.xlu1 %78  ;;  %v502_v37 = vpop.xlane.xlu0 %76 }
  0xbf   :  { %301 = vrsqrt.f32 %v500_v36  ;;  %vm121_vm8 = vcmp.eq.f32.partialorder %v500_v36, inf  ;;  %vm123_vm9 = vcmp.eq.f32.partialorder %v500_v36, 0.0  ;;  %v124_v63 = vand.u32 2147483648, %v500_v36 }
  0xc0   :  { %303 = vrsqrt.f32 %v502_v37  ;;  %vm114_vm10 = vcmp.eq.f32.partialorder %v502_v37, inf  ;;  %vm116_vm11 = vcmp.eq.f32.partialorder %v502_v37, 0.0  ;;  %v117_v17 = vand.u32 2147483648, %v502_v37 }
  0xc1   :  { %v294_v38 = vpop.eup %293 }
  0xc2   :  { %v296_v39 = vpop.eup %295  ;;  %v99_v40 = vmul.f32 %v294_v38, %v73_v32  ;;  %v506_v41 = vpop.xlane.xlu1 %82 }
  0xc3   :  { %v508_v42 = vpop.xlane.xlu0 %80  ;;  %v85_v45 = vmul.f32 %v296_v39, %v69_v33  ;;  %305 = vrsqrt.f32 %v506_v41  ;;  %vm135_vm12 = vcmp.eq.f32.partialorder %v506_v41, inf  ;;  %vm137_vm13 = vcmp.eq.f32.partialorder %v506_v41, 0.0 }
  0xc4   :  { %v101_v46 = vsel %vm100_vm0, %v73_v32, %v99_v40  ;;  %307 = vrsqrt.f32 %v508_v42  ;;  %v138_v20 = vand.u32 2147483648, %v506_v41  ;;  %vm128_vm14 = vcmp.eq.f32.partialorder %v508_v42, inf }
  0xc5   :  { %v298_v47 = vpop.eup %297  ;;  %v104_v48 = vsel %vm102_vm1, %v103_v44, %v101_v46  ;;  %v87_v51 = vsel %vm86_vm2, %v69_v33, %v85_v45  ;;  %vm130_vm15 = vcmp.eq.f32.partialorder %v508_v42, 0.0  ;;  %v131_v28 = vand.u32 2147483648, %v508_v42 }
  0xc6   :  { %v300_v50 = vpop.eup %299  ;;  %v106_v52 = vmul.f32 %v298_v47, %v75_v34  ;;  %v517_v54 = vpop.xlane.xlu1 %150  ;;  %v222_v57 = vmax.f32 %v104_v48, 1e-12  ;;  %v90_v61 = vsel %vm88_vm3, %v89_v49, %v87_v51 }
  0xc7   :  { %v519_v55 = vpop.xlane.xlu0 %148  ;;  %v92_v56 = vmul.f32 %v300_v50, %v71_v35  ;;  %309 = vrsqrt.f32 %v517_v54  ;;  %v220_v16 = vmax.f32 %v90_v61, 1e-12  ;;  %vm173_vm0 = vcmp.eq.f32.partialorder %v517_v54, inf }
  0xc8   :  { %v108_v58 = vsel %vm107_vm4, %v75_v34, %v106_v52  ;;  %311 = vrsqrt.f32 %v519_v55  ;;  %vm175_vm1 = vcmp.eq.f32.partialorder %v517_v54, 0.0  ;;  %v176_v32 = vand.u32 2147483648, %v517_v54 }
  0xc9   :  { %v302_v60 = vpop.eup %301  ;;  %v94_v62 = vsel %vm93_vm6, %v71_v35, %v92_v56  ;;  %v111_v4 = vsel %vm109_vm5, %v110_v53, %v108_v58  ;;  %313 = vrcp.f32 %v222_v57  ;;  %vm166_vm2 = vcmp.eq.f32.partialorder %v519_v55, inf }
  0xca   :  { %v304_v3 = vpop.eup %303  ;;  %v97_v6 = vsel %vm95_vm7, %v96_v59, %v94_v62  ;;  %v120_v7 = vmul.f32 %v302_v60, %v500_v36  ;;  %v529_v10 = vpop.xlane.xlu1 %154  ;;  %v223_v19 = vmax.f32 %v111_v4, 1e-12  ;;  %vm168_vm3 = vcmp.eq.f32.partialorder %v519_v55, 0.0 }
  0xcb   :  { %v531_v11 = vpop.xlane.xlu0 %152  ;;  %v221_v14 = vmax.f32 %v97_v6, 1e-12  ;;  %v113_v15 = vmul.f32 %v304_v3, %v502_v37  ;;  %vm187_vm4 = vcmp.eq.f32.partialorder %v529_v10, inf  ;;  %vm189_vm5 = vcmp.eq.f32.partialorder %v529_v10, 0.0 }
  0xcc   :  { %v122_v22 = vsel %vm121_vm8, %v500_v36, %v120_v7  ;;  %v169_v36 = vand.u32 2147483648, %v519_v55  ;;  %v190_v51 = vand.u32 2147483648, %v529_v10  ;;  %vm180_vm6 = vcmp.eq.f32.partialorder %v531_v11, inf }
  0xcd   :  { %v306_v18 = vpop.eup %305  ;;  %315 = vrcp.f32 %v221_v14  ;;  %v115_v26 = vsel %vm114_vm10, %v502_v37, %v113_v15  ;;  %v125_v30 = vsel %vm123_vm9, %v124_v63, %v122_v22  ;;  %vm182_vm7 = vcmp.eq.f32.partialorder %v531_v11, 0.0 }
  0xce   :  { %v308_v21 = vpop.eup %307  ;;  %v134_v23 = vmul.f32 %v306_v18, %v506_v41  ;;  %317 = vrsqrt.f32 %v529_v10  ;;  %v546_v24 = vpop.xlane.xlu1 %158  ;;  %v118_v33 = vsel %vm116_vm11, %v117_v17, %v115_v26  ;;  %v225_v39 = vmax.f32 %v125_v30, 1e-12 }
  0xcf   :  { %v548_v25 = vpop.xlane.xlu0 %156  ;;  %v127_v27 = vmul.f32 %v308_v21, %v508_v42  ;;  %319 = vrsqrt.f32 %v531_v11  ;;  %v224_v46 = vmax.f32 %v118_v33, 1e-12  ;;  %v183_v4 = vand.u32 2147483648, %v531_v11 }
  0xd0   :  { %321 = vrcp.f32 %v220_v16  ;;  %v136_v31 = vsel %vm135_vm12, %v506_v41, %v134_v23  ;;  %vm201_vm8 = vcmp.eq.f32.partialorder %v546_v24, inf  ;;  %vm203_vm9 = vcmp.eq.f32.partialorder %v546_v24, 0.0 }
  0xd1   :  { %v310_v29 = vpop.eup %309  ;;  %323 = vrcp.f32 %v223_v19  ;;  %v129_v34 = vsel %vm128_vm14, %v508_v42, %v127_v27  ;;  %v139_v40 = vsel %vm137_vm13, %v138_v20, %v136_v31  ;;  %v204_v16 = vand.u32 2147483648, %v546_v24 }
  0xd2   :  { %v172_v35 = vmul.f32 %v310_v29, %v517_v54  ;;  %325 = vrsqrt.f32 %v546_v24  ;;  %v576_v38 = vpop.xlane.xlu1 %162  ;;  %v312_v37 = vpop.eup %311  ;;  %v132_v47 = vsel %vm130_vm15, %v131_v28, %v129_v34  ;;  %v227_v53 = vmax.f32 %v139_v40, 1e-12 }
  0xd3   :  { %327 = vrsqrt.f32 %v548_v25  ;;  %v584_v45 = vpop.xlane.xlu0 %160  ;;  %v165_v49 = vmul.f32 %v312_v37, %v519_v55  ;;  %v314_v50 = vpop.eup %313  ;;  %v226_v56 = vmax.f32 %v132_v47, 1e-12  ;;  %vm194_vm10 = vcmp.eq.f32.partialorder %v548_v25, inf }
  0xd4   :  { %v174_v44 = vsel %vm173_vm0, %v517_v54, %v172_v35  ;;  %329 = vrsqrt.f32 %v576_v38  ;;  %vm196_vm11 = vcmp.eq.f32.partialorder %v548_v25, 0.0  ;;  %v197_v26 = vand.u32 2147483648, %v548_v25 }
  0xd5   :  { %v177_v48 = vsel %vm175_vm1, %v176_v32, %v174_v44  ;;  %v167_v42 = vsel %vm166_vm2, %v519_v55, %v165_v49  ;;  %331 = vrsqrt.f32 %v584_v45  ;;  %vm215_vm12 = vcmp.eq.f32.partialorder %v576_v38, inf }
  0xd6   :  { %v239_v41 = vmul.f32 %v513_v43, %v177_v48  ;;  %333 = vrcp.f32 %v225_v39  ;;  %v170_v58 = vsel %vm168_vm3, %v169_v36, %v167_v42  ;;  %vm217_vm13 = vcmp.eq.f32.partialorder %v576_v38, 0.0 }
  0xd7   :  { %v316_v52 = vpop.eup %315  ;;  %335 = vrcp.f32 %v224_v46  ;;  %v238_v60 = vmul.f32 %v513_v43, %v170_v58  ;;  %vm208_vm14 = vcmp.eq.f32.partialorder %v584_v45, inf  ;;  %v211_v44 = vand.u32 2147483648, %v584_v45 }
  0xd8   :  { %v318_v54 = vpop.eup %317  ;;  %v247_v57 = vmul.f32 %v316_v52, %v239_v41  ;;  %337 = vrcp.f32 %v227_v53  ;;  %vm210_vm15 = vcmp.eq.f32.partialorder %v584_v45, 0.0 }
  0xd9   :  { %v320_v59 = vpop.eup %319  ;;  %v186_v61 = vmul.f32 %v318_v54, %v529_v10  ;;  %339 = vrcp.f32 %v226_v56 }
  0xda   :  { %v322_v62 = vpop.eup %321  ;;  %v255_v63 = vmul.f32 %v247_v57, %v478_v5  ;;  %v179_v3 = vmul.f32 %v320_v59, %v531_v11 }
  0xdb   :  { %v324_v6 = vpop.eup %323  ;;  %v246_v55 = vmul.f32 %v322_v62, %v238_v60  ;;  %v188_v7 = vsel %vm187_vm4, %v529_v10, %v186_v61 }
  0xdc   :  { %v326_v14 = vpop.eup %325  ;;  %263 = vst [vmem:[#allocation8 + $0x8] sm:$0xff] %v255_v63  ;;  %v191_v5 = vsel %vm189_vm5, %v190_v51, %v188_v7  ;;  %v181_v15 = vsel %vm180_vm6, %v531_v11, %v179_v3 }
  0xdd   :  { %v328_v17 = vpop.eup %327  ;;  %v254_v18 = vmul.f32 %v246_v55, %v470_v1  ;;  %v241_v19 = vmul.f32 %v513_v43, %v191_v5  ;;  %v184_v20 = vsel %vm182_vm7, %v183_v4, %v181_v15  ;;  %v200_v21 = vmul.f32 %v326_v14, %v546_v24 }
  0xde   :  { %v240_v22 = vmul.f32 %v513_v43, %v184_v20  ;;  %v193_v10 = vmul.f32 %v328_v17, %v548_v25  ;;  %v330_v11 = vpop.eup %329 }
  0xdf   :  { %262 = vst [vmem:[#allocation8] sm:$0xff] %v254_v18  ;;  %v249_v23 = vmul.f32 %v324_v6, %v241_v19  ;;  %v202_v1 = vsel %vm201_vm8, %v546_v24, %v200_v21  ;;  %v332_v30 = vpop.eup %331  ;;  %v214_v34 = vmul.f32 %v330_v11, %v576_v38  ;;  %v218_v24 = vand.u32 2147483648, %v576_v38 }
  0xe0   :  { %v248_v27 = vmul.f32 %v314_v50, %v240_v22  ;;  %v205_v28 = vsel %vm203_vm9, %v204_v16, %v202_v1  ;;  %v195_v29 = vsel %vm194_vm10, %v548_v25, %v193_v10  ;;  %v334_v35 = vpop.eup %333  ;;  %v207_v39 = vmul.f32 %v332_v30, %v584_v45 }
  0xe1   :  { %v257_v31 = vmul.f32 %v249_v23, %v472_v2  ;;  %v243_v32 = vmul.f32 %v513_v43, %v205_v28  ;;  %v198_v33 = vsel %vm196_vm11, %v197_v26, %v195_v29  ;;  %v336_v25 = vpop.eup %335  ;;  %v216_v2 = vsel %vm215_vm12, %v576_v38, %v214_v34 }
  0xe2   :  { %v256_v36 = vmul.f32 %v248_v27, %v468_v0  ;;  %v242_v37 = vmul.f32 %v513_v43, %v198_v33  ;;  %v219_v0 = vsel %vm217_vm13, %v218_v24, %v216_v2  ;;  %v209_v47 = vsel %vm208_vm14, %v584_v45, %v207_v39  ;;  %v338_v48 = vpop.eup %337 }
  0xe3   :  { %265 = vst [vmem:[#allocation8 + $0x18] sm:$0xff] %v257_v31  ;;  %v251_v40 = vmul.f32 %v334_v35, %v243_v32  ;;  %v245_v50 = vmul.f32 %v513_v43, %v219_v0  ;;  %v212_v41 = vsel %vm210_vm15, %v211_v44, %v209_v47  ;;  %v340_v51 = vpop.eup %339 }
  0xe4   :  { %264 = vst [vmem:[#allocation8 + $0x10] sm:$0xff] %v256_v36  ;;  %v250_v46 = vmul.f32 %v336_v25, %v242_v37  ;;  %v244_v53 = vmul.f32 %v513_v43, %v212_v41 }
  0xe5   :  { %v259_v49 = vmul.f32 %v251_v40, %v484_v8  ;;  %v253_v42 = vmul.f32 %v338_v48, %v245_v50 }
  0xe6   :  { %v258_v52 = vmul.f32 %v250_v46, %v486_v9  ;;  %v252_v38 = vmul.f32 %v340_v51, %v244_v53 }
  0xe7   :  { %267 = vst [vmem:[#allocation8 + $0x28] sm:$0xff] %v259_v49  ;;  %v261_v54 = vmul.f32 %v253_v42, %v492_v12 }
  0xe8   :  { %266 = vst [vmem:[#allocation8 + $0x20] sm:$0xff] %v258_v52  ;;  %v260_v45 = vmul.f32 %v252_v38, %v494_v13 }
  0xe9   :  { %269 = vst [vmem:[#allocation8 + $0x38] sm:$0xff] %v261_v54 }
  0xea   :  { %268 = vst [vmem:[#allocation8 + $0x30] sm:$0xff] %v260_v45 }
  0xeb   :  { %396 = shalt.err (!%p393_p6)
}
  0xec   :  { %s397_s15 = scalar_lea.hbm %s677_s3, 1024 }
  0xed   :  { %p398_p7 = scmp.ne.s32.totalorder %s677_s3, %s397_s15  ;;  %p401_p8 = scmp.lt.u32.totalorder %s397_s15, %s677_s3 }
  0xef   :  { %p403_p9 = pnand %p401_p8, %p398_p7 }
  0xf1   :  { %406 = shalt.err (!%p403_p9)
}
  0xf2   :  { %281 = dma.vmem_to_hbm [thread:$0]  %s276_s11, 1024, %s677_s3, [#allocation5], %s414_s22, %s414_s22, %s415_s23  }
  0xf3   :  { %411 = dma.done.wait [#allocation5], 1024  }
  0xf4   :  { %412 = vsyncadd [#allocation5], 4294966272 }
  0xf5   :  { %285 = vsyncpa [#allocation4], 1 }
  0xf6   :  { %286 = vsyncpa [#allocation7], 1 }
  0xf7   :  { %287 = vsyncpa [#allocation5], 1 }

</bundles_post_ra>
